<compile_context>
chip_gen: v6e
topology: v6e:2x2x1
jax: 0.10.0
libtpu: 0.0.40
codegen_flags: <defaults>
</compile_context>

<pallas_src>
import functools

import jax
import jax.numpy as jnp
from jax.experimental import pallas as pl
from jax.experimental.pallas import tpu as pltpu

RAYS = 36          # number of rays per box (fixed by the module)
NUM_CORES = 2      # leading "parallel" grid axis (megacore split on v7x)


def _round_up(x, m):
    return (x + m - 1) // m * m


def _mask_iou_loss_kernel(pred_ref, tgt_ref, w_ref, out_ref, *,
                          n_rows, tile_n, num_tiles, tiles_per_core,
                          sum_weight):
    c = pl.program_id(0)          # megacore split index
    i = pl.program_id(1)          # tile index within this core's range
    tile_idx = c * tiles_per_core + i

    # Zero this core's resident (8, 128) output block once.
    @pl.when(i == 0)
    def _init():
        out_ref[...] = jnp.zeros_like(out_ref)

    # Skip compute entirely for clamped-duplicate / overflow tiles.
    @pl.when(tile_idx < num_tiles)
    def _compute():
        # Load the tile and upcast in-VMEM (inputs may be bf16).
        p = pred_ref[...].astype(jnp.float32)        # (tile_n, RAYS)
        t = tgt_ref[...].astype(jnp.float32)         # (tile_n, RAYS)
        s = w_ref[...].astype(jnp.float32)           # (tile_n, Cw)

        l_max = jnp.maximum(p, t)
        l_min = jnp.maximum(jnp.minimum(p, t), jnp.float32(1e-6))

        num = jnp.sum(l_max, axis=-1, keepdims=True)   # (tile_n, 1)
        den = jnp.sum(l_min, axis=-1, keepdims=True)   # (tile_n, 1) >= 36e-6
        if sum_weight:
            w = jnp.sum(s, axis=-1, keepdims=True)     # (tile_n, 1)
        else:
            w = s                                      # already (tile_n, 1)

        row_loss = jnp.log(num / den) * w              # (tile_n, 1)

        row0 = tile_idx * tile_n
        is_full = row0 + tile_n <= n_rows

        # Fast path: tile is entirely in-bounds -> no mask ops at all.
        @pl.when(is_full)
        def _fast():
            out_ref[0:1, 0:1] += jnp.sum(row_loss)

        # Slow path: last (partial) tile -> mask BEFORE accumulation so
        # NaN/Inf from log() over padded/garbage rows never reaches the sum.
        @pl.when(jnp.logical_not(is_full))
        def _masked():
            rows = row0 + jax.lax.broadcasted_iota(jnp.int32, (tile_n, 1), 0)
            contrib = jnp.where(rows < n_rows, row_loss, 0.0)
            out_ref[0:1, 0:1] += jnp.sum(contrib)


def mask_iou_loss(pred_rays, target_rays, target_scores, target_scores_sum,
                  *, weight=None, tile_n=4096):
    """Pallas implementation of MaskIOULoss.forward. Returns a scalar f32.

    If `weight` (shape (N,), == target_scores.sum(-1)) is provided, it is
    streamed instead of the full (N, C) target_scores.
    """
    n, r = pred_rays.shape
    assert r == RAYS
    assert target_rays.shape == (n, r)
    assert n >= 1

    if weight is not None:
        sw = jnp.reshape(weight, (n, 1))
        sum_weight = False
    else:
        sw = target_scores
        sum_weight = True
    c_dim = sw.shape[-1]

    # Cap the row tile at (sublane-rounded) N so tiny problems do not allocate
    # huge lane-padded VMEM buffers; keep it a multiple of 8 sublanes.
    tile_n = max(8, min(tile_n, _round_up(n, 8)))

    num_tiles = pl.cdiv(n, tile_n)                 # python ints (static)
    tiles_per_core = pl.cdiv(num_tiles, NUM_CORES)
    last_tile = num_tiles - 1

    def row_map(c, i):
        # Clamp so the DMA window always starts inside the array; tiles that
        # logically fall outside [0, num_tiles) skip compute in-kernel.
        return (jnp.minimum(c * tiles_per_core + i, last_tile), 0)

    kernel = functools.partial(
        _mask_iou_loss_kernel,
        n_rows=n, tile_n=tile_n, num_tiles=num_tiles,
        tiles_per_core=tiles_per_core, sum_weight=sum_weight)

    # Explicit VMEM budget: blocks lane-pad to 128 and are double-buffered.
    def _buf_bytes(arr, width):
        return tile_n * _round_up(width, 128) * jnp.dtype(arr.dtype).itemsize
    usage = 2 * (_buf_bytes(pred_rays, r) + _buf_bytes(target_rays, r)
                 + _buf_bytes(sw, c_dim))
    vmem_limit = int(min(max(usage + (8 << 20), 32 << 20), 60 << 20))

    out = pl.pallas_call(
        kernel,
        out_shape=jax.ShapeDtypeStruct((NUM_CORES * 8, 128), jnp.float32),
        grid_spec=pltpu.PrefetchScalarGridSpec(
            num_scalar_prefetch=0,
            grid=(NUM_CORES, tiles_per_core),
            in_specs=[
                pl.BlockSpec((tile_n, r), row_map),
                pl.BlockSpec((tile_n, r), row_map),
                pl.BlockSpec((tile_n, c_dim), row_map),
            ],
            out_specs=pl.BlockSpec((8, 128), lambda c, i: (c, 0)),
        ),
        compiler_params=pltpu.CompilerParams(
            dimension_semantics=("parallel", "arbitrary"),
            vmem_limit_bytes=vmem_limit),
    )(pred_rays, target_rays, sw)

    tss = jnp.asarray(target_scores_sum, jnp.float32)
    # Only element [0, 0] of each core's block is nonzero; sum picks them up.
    return jnp.sum(out) / tss


def _reference(pred_rays, target_rays, target_scores, target_scores_sum):
    weight = target_scores.sum(-1)
    l_max = jnp.maximum(pred_rays, target_rays)
    l_min = jnp.maximum(jnp.minimum(pred_rays, target_rays), 1e-6)
    loss = jnp.log(l_max.sum(axis=1) / l_min.sum(axis=1))
    loss = loss * weight
    return loss.sum() / target_scores_sum


if __name__ == "__main__":
    key = jax.random.PRNGKey(0)

    # --- Small test matching the module signature (streams target_scores) ---
    k1, k2, k3 = jax.random.split(key, 3)
    N, C = 10, 4  # nr_box (not a tile multiple), num classes
    pred_rays = jax.random.uniform(k1, (N, RAYS), jnp.float32,
                                   minval=0.05, maxval=5.0)
    target_rays = jax.random.uniform(k2, (N, RAYS), jnp.float32,
                                     minval=0.05, maxval=5.0)
    target_scores = jax.random.uniform(k3, (N, C), jnp.float32)
    target_scores_sum = target_scores.sum()

    out = mask_iou_loss(pred_rays, target_rays, target_scores,
                        target_scores_sum)
    out = jax.block_until_ready(out)
    ref = _reference(pred_rays, target_rays, target_scores, target_scores_sum)
    assert jnp.allclose(out, ref, rtol=1e-5, atol=1e-6), (out, ref)

    # --- Precomputed-weight path (avoids streaming target_scores) ---
    w = target_scores.sum(-1)
    out_w = mask_iou_loss(pred_rays, target_rays, None, target_scores_sum,
                          weight=w)
    out_w = jax.block_until_ready(out_w)
    assert jnp.allclose(out_w, ref, rtol=1e-5, atol=1e-6), (out_w, ref)

    # --- Multi-tile test: exercises fast path, masked tail tile, and the
    #     skipped clamped-duplicate tile on the 2-way core split ---
    k4, k5, k6 = jax.random.split(jax.random.PRNGKey(1), 3)
    N2, C2 = 531, 5
    p2 = jax.random.uniform(k4, (N2, RAYS), jnp.float32, minval=0.05, maxval=5.0)
    t2 = jax.random.uniform(k5, (N2, RAYS), jnp.float32, minval=0.05, maxval=5.0)
    s2 = jax.random.uniform(k6, (N2, C2), jnp.float32)
    tss2 = s2.sum()
    out2 = jax.block_until_ready(mask_iou_loss(p2, t2, s2, tss2, tile_n=64))
    ref2 = _reference(p2, t2, s2, tss2)
    assert jnp.allclose(out2, ref2, rtol=1e-4, atol=1e-5), (out2, ref2)

    print("KERNEL_OK")
</pallas_src>

<mosaic_0001>
module attributes {stable_mosaic.version = 11 : i64} {
  func.func @_mask_iou_loss_kernel(%arg0: i32, %arg1: i32, %arg2: memref<16x36xf32, #tpu.memory_space<vmem>>, %arg3: memref<16x36xf32, #tpu.memory_space<vmem>>, %arg4: memref<16x4xf32, #tpu.memory_space<vmem>>, %arg5: memref<8x128xf32, #tpu.memory_space<vmem>>) attributes {dimension_semantics = [#tpu.dimension_semantics<parallel>, #tpu.dimension_semantics<arbitrary>], iteration_bounds = array<i64: 2, 1>, scalar_prefetch = 0 : i64, scratch_operands = 0 : i64, tpu.core_type = #tpu.core_type<tc>, window_params = [{transform_indices = @transform_0, window_bounds = array<i64: 16, 36>}, {transform_indices = @transform_1, window_bounds = array<i64: 16, 36>}, {transform_indices = @transform_2, window_bounds = array<i64: 16, 4>}, {transform_indices = @transform_3, window_bounds = array<i64: 8, 128>}]} {
    %c1_i32 = arith.constant 1 : i32
    %0 = arith.muli %arg0, %c1_i32 : i32
    %1 = arith.addi %0, %arg1 : i32
    %c0_i32 = arith.constant 0 : i32
    %2 = arith.cmpi eq, %arg1, %c0_i32 : i32
    %3 = arith.extui %2 : i1 to i32
    %c0_i32_0 = arith.constant 0 : i32
    %4 = arith.cmpi ne, %3, %c0_i32_0 : i32
    scf.if %4 {
      %cst = arith.constant 0.000000e+00 : f32
      %8 = vector.broadcast %cst : f32 to vector<8x128xf32>
      %c0 = arith.constant 0 : index
      %c0_3 = arith.constant 0 : index
      %9 = vector.load %arg5[%c0, %c0_3] : memref<8x128xf32, #tpu.memory_space<vmem>>, vector<8x128xf32>
      tpu.vector_store %arg5[%c0, %c0_3], %8 {strides = array<i32>} : memref<8x128xf32, #tpu.memory_space<vmem>>, vector<8x128xf32>,
    } else {
    }
    %c1_i32_1 = arith.constant 1 : i32
    %5 = arith.cmpi slt, %1, %c1_i32_1 : i32
    %6 = arith.extui %5 : i1 to i32
    %c0_i32_2 = arith.constant 0 : i32
    %7 = arith.cmpi ne, %6, %c0_i32_2 : i32
    scf.if %7 {
      %c0 = arith.constant 0 : index
      %c0_3 = arith.constant 0 : index
      %8 = vector.load %arg2[%c0, %c0_3] : memref<16x36xf32, #tpu.memory_space<vmem>>, vector<16x36xf32>
      %c0_4 = arith.constant 0 : index
      %c0_5 = arith.constant 0 : index
      %9 = vector.load %arg3[%c0_4, %c0_5] : memref<16x36xf32, #tpu.memory_space<vmem>>, vector<16x36xf32>
      %c0_6 = arith.constant 0 : index
      %c0_7 = arith.constant 0 : index
      %10 = vector.load %arg4[%c0_6, %c0_7] : memref<16x4xf32, #tpu.memory_space<vmem>>, vector<16x4xf32>
      %11 = arith.maximumf %8, %9 : vector<16x36xf32>
      %12 = arith.minimumf %8, %9 : vector<16x36xf32>
      %cst = arith.constant 9.99999997E-7 : f32
      %13 = vector.broadcast %cst : f32 to vector<16x36xf32>
      %14 = arith.maximumf %12, %13 : vector<16x36xf32>
      %cst_8 = arith.constant dense<0.000000e+00> : vector<16xf32>
      %15 = vector.multi_reduction <add>, %11, %cst_8 [1] : vector<16x36xf32> to vector<16xf32>
      %16 = vector.shape_cast %15 : vector<16xf32> to vector<16x1xf32>
      %cst_9 = arith.constant dense<0.000000e+00> : vector<16xf32>
      %17 = vector.multi_reduction <add>, %14, %cst_9 [1] : vector<16x36xf32> to vector<16xf32>
      %18 = vector.shape_cast %17 : vector<16xf32> to vector<16x1xf32>
      %cst_10 = arith.constant dense<0.000000e+00> : vector<16xf32>
      %19 = vector.multi_reduction <add>, %10, %cst_10 [1] : vector<16x4xf32> to vector<16xf32>
      %20 = vector.shape_cast %19 : vector<16xf32> to vector<16x1xf32>
      %21 = arith.divf %16, %18 : vector<16x1xf32>
      %22 = math.log %21 : vector<16x1xf32>
      %23 = arith.mulf %22, %20 : vector<16x1xf32>
      %c16_i32 = arith.constant 16 : i32
      %24 = arith.muli %1, %c16_i32 : i32
      %c16_i32_11 = arith.constant 16 : i32
      %25 = arith.addi %24, %c16_i32_11 : i32
      %c10_i32 = arith.constant 10 : i32
      %26 = arith.cmpi sle, %25, %c10_i32 : i32
      %27 = arith.extui %26 : i1 to i32
      %c0_i32_12 = arith.constant 0 : i32
      %28 = arith.cmpi ne, %27, %c0_i32_12 : i32
      scf.if %28 {
        %c0_14 = arith.constant 0 : index
        %c0_15 = arith.constant 0 : index
        %32 = vector.load %arg5[%c0_14, %c0_15] : memref<8x128xf32, #tpu.memory_space<vmem>>, vector<1x1xf32>
        %33 = vector.shape_cast %23 : vector<16x1xf32> to vector<1x16x1xf32>
        %cst_16 = arith.constant dense<0.000000e+00> : vector<1xf32>
        %34 = vector.multi_reduction <add>, %33, %cst_16 [1, 2] : vector<1x16x1xf32> to vector<1xf32>
        %35 = vector.shape_cast %34 : vector<1xf32> to vector<1x1x1xf32>
        %36 = vector.extract %35[0, 0, 0] : f32 from vector<1x1x1xf32>
        %37 = vector.broadcast %36 : f32 to vector<1x1xf32>
        %38 = arith.addf %32, %37 : vector<1x1xf32>
        %c0_17 = arith.constant 0 : index
        %c0_18 = arith.constant 0 : index
        %39 = vector.load %arg5[%c0_17, %c0_18] : memref<8x128xf32, #tpu.memory_space<vmem>>, vector<1x1xf32>
        tpu.vector_store %arg5[%c0_17, %c0_18], %38 {strides = array<i32>} : memref<8x128xf32, #tpu.memory_space<vmem>>, vector<1x1xf32>,
      } else {
      }
      %true = arith.constant true
      %29 = arith.xori %26, %true : i1
      %30 = arith.extui %29 : i1 to i32
      %c0_i32_13 = arith.constant 0 : i32
      %31 = arith.cmpi ne, %30, %c0_i32_13 : i32
      scf.if %31 {
        %32 = tpu.iota {dimensions = array<i32: 0>} : vector<16x1xi32>
        %33 = vector.broadcast %24 : i32 to vector<16x1xi32>
        %34 = arith.addi %33, %32 : vector<16x1xi32>
        %c10_i32_14 = arith.constant 10 : i32
        %35 = vector.broadcast %c10_i32_14 : i32 to vector<16x1xi32>
        %36 = arith.cmpi slt, %34, %35 : vector<16x1xi32>
        %cst_15 = arith.constant 0.000000e+00 : f32
        %37 = vector.broadcast %cst_15 : f32 to vector<16x1xf32>
        %38 = arith.select %36, %23, %37 : vector<16x1xi1>, vector<16x1xf32>
        %c0_16 = arith.constant 0 : index
        %c0_17 = arith.constant 0 : index
        %39 = vector.load %arg5[%c0_16, %c0_17] : memref<8x128xf32, #tpu.memory_space<vmem>>, vector<1x1xf32>
        %40 = vector.shape_cast %38 : vector<16x1xf32> to vector<1x16x1xf32>
        %cst_18 = arith.constant dense<0.000000e+00> : vector<1xf32>
        %41 = vector.multi_reduction <add>, %40, %cst_18 [1, 2] : vector<1x16x1xf32> to vector<1xf32>
        %42 = vector.shape_cast %41 : vector<1xf32> to vector<1x1x1xf32>
        %43 = vector.extract %42[0, 0, 0] : f32 from vector<1x1x1xf32>
        %44 = vector.broadcast %43 : f32 to vector<1x1xf32>
        %45 = arith.addf %39, %44 : vector<1x1xf32>
        %c0_19 = arith.constant 0 : index
        %c0_20 = arith.constant 0 : index
        %46 = vector.load %arg5[%c0_19, %c0_20] : memref<8x128xf32, #tpu.memory_space<vmem>>, vector<1x1xf32>
        tpu.vector_store %arg5[%c0_19, %c0_20], %45 {strides = array<i32>} : memref<8x128xf32, #tpu.memory_space<vmem>>, vector<1x1xf32>,
      } else {
      }
    } else {
    }
    return
  }
  func.func @transform_0(%arg0: i32, %arg1: i32) -> (i32, i32) {
    %c1_i32 = arith.constant 1 : i32
    %0 = arith.muli %arg0, %c1_i32 : i32
    %1 = arith.addi %0, %arg1 : i32
    %c0_i32 = arith.constant 0 : i32
    %2 = arith.minsi %1, %c0_i32 : i32
    %c0_i32_0 = arith.constant 0 : i32
    %c0_i32_1 = arith.constant 0 : i32
    return %2, %c0_i32_0 : i32, i32
  }
  func.func @transform_1(%arg0: i32, %arg1: i32) -> (i32, i32) {
    %c1_i32 = arith.constant 1 : i32
    %0 = arith.muli %arg0, %c1_i32 : i32
    %1 = arith.addi %0, %arg1 : i32
    %c0_i32 = arith.constant 0 : i32
    %2 = arith.minsi %1, %c0_i32 : i32
    %c0_i32_0 = arith.constant 0 : i32
    %c0_i32_1 = arith.constant 0 : i32
    return %2, %c0_i32_0 : i32, i32
  }
  func.func @transform_2(%arg0: i32, %arg1: i32) -> (i32, i32) {
    %c1_i32 = arith.constant 1 : i32
    %0 = arith.muli %arg0, %c1_i32 : i32
    %1 = arith.addi %0, %arg1 : i32
    %c0_i32 = arith.constant 0 : i32
    %2 = arith.minsi %1, %c0_i32 : i32
    %c0_i32_0 = arith.constant 0 : i32
    %c0_i32_1 = arith.constant 0 : i32
    return %2, %c0_i32_0 : i32, i32
  }
  func.func @transform_3(%arg0: i32, %arg1: i32) -> (i32, i32) {
    %c0_i32 = arith.constant 0 : i32
    %c0_i32_0 = arith.constant 0 : i32
    return %arg0, %c0_i32 : i32, i32
  }
}

</mosaic_0001>

<bundles_post_ra>
// kernel: tpu_custom_call.1
= control target key start
LH: loop header
LB: loop body
LE: loop exit
PB: predicated region body
PF: predicated region fallthrough
CT: control target
= control target key end

     0   :  { %8 = vsyncpa [#allocation3], 0  ;;  %s979_s0 = inlined_call_operand.vmem [shape: f32[10,36], index: 0, kind: input, shape index: {}]   ;;  %s980_s1 = inlined_call_operand.hbm [shape: f32[10,36], index: 1, kind: input, shape index: {}]   ;;  %s981_s2 = inlined_call_operand.vmem [shape: f32[10,4], index: 2, kind: input, shape index: {}]   ;;  %s982_s3 = inlined_call_operand.hbm [shape: f32[16,128], index: 3, kind: output, shape index: {}]  }
   0x1   :  { %10 = vsyncpa [#allocation3 + $0x1], 0 }
   0x2   :  { %11 = vsyncpa [#allocation4], 0 }
   0x3   :  { %13 = vsyncpa [#allocation4 + $0x1], 0  ;;  %s804_s12 = smov 0   ;;  %s806_s13 = smov 0  }
   0x4   :  { %s808_s14 = smov 0   ;;  %s810_s15 = smov 0  }
   0x5   :  { %s812_s16 = smov 0   ;;  %s814_s17 = smov 0  }
   0x6   :  { %s816_s18 = smov 0   ;;  %s818_s19 = smov 0  }
   0x7 LB: > { %s524_s20 = sadd.s32 4294967295, %s777_s19   ;;  %s525_s21 = sadd.s32 4294967294, %s777_s19   ;;  %s777_s19 = sphi %s818_s19, %s19_s19   ;;  %s773_s18 = sphi %s816_s18, %s999_s18   ;;  %s769_s17 = sphi %s814_s17, %s998_s17   ;;  %s765_s16 = sphi %s812_s16, %s969_s16   ;;  %s761_s15 = sphi %s810_s15, %s997_s15   ;;  %s757_s14 = sphi %s808_s14, %s996_s14   ;;  %s753_s13 = sphi %s806_s13, %s995_s13   ;;  %s749_s12 = sphi %s804_s12, %s994_s12  }
   0x8   : > { %s31_s22 = sadd.s32 1, %s773_s18  ;;  %p746_p1 = scmp.ne.s32.totalorder %s765_s16, 0 }
   0x9   : > { %p33_p0 = scmp.ge.s32.totalorder %s31_s22, 2  ;;  %p84_p2 = scmp.eq.s32.totalorder %s777_s19, 0 }
   0xa   : > { %p89_p3 = scmp.ne.s32.totalorder %s765_s16, %s761_s15  ;;  %p90_p5 = scmp.eq.s32.totalorder %s524_s20, 0 }
   0xb   : > { %s1001_s22 = smov (%p33_p0, %s31_s22), 0  ;;  %p850_p4 = por %p746_p1, %p84_p2 }
   0xc   : > { %p854_p6 = por %p90_p5, %p89_p3  ;;  %s131_s25 = ssub.s32 %s773_s18, %s1001_s22 }
   0xd   : > { %p132_p7 = scmp.eq.s32.totalorder %s131_s25, 0  ;;  %s134_s26 = sadd.s32 1, %s757_s14 }
   0xe   : > { %s986_s24 = scalar_select %p854_p6, 1, 0 }
   0xf   : > { %s862_s27 = scalar_select %p132_p7, %s757_s14, %s134_s26  }
  0x10   : > { %p144_p8 = scmp.ne.s32.totalorder %s757_s14, %s753_s13  ;;  %p145_p9 = scmp.eq.s32.totalorder %s524_s20, 1 }
  0x11   : > { %p150_p10 = scmp.ne.s32.totalorder %s753_s13, %s749_s12  ;;  %p151_p11 = scmp.eq.s32.totalorder %s525_s21, 1 }
  0x12   : > { %p868_p12 = por %p145_p9, %p144_p8  ;;  %p563_p1 = scmp.lt.s32.totalorder %s777_s19, 2 }
  0x13   : > { %p873_p0 = por %p151_p11, %p150_p10  ;;  %s779_s30 = smov [#allocation2]  }
  0x14   : > { %s987_s28 = scalar_select %p868_p12, 1, 0 }
  0x15   : > { %s988_s29 = scalar_select %p873_p0, 1, 0 }
  0x16   : > { %s200_s4 = sshll.u32 %s779_s30, 4  ;;  %p880_p2 = pnand %p563_p1, %p850_p4  ;;  %s201_s4 = int_to_ptr.vmem [resolvable:$true] %s200_s4 }
  0x17   : > { %s648_s8 = scalar_lea.hbm %s980_s1, 256 }
  0x18   : > { %p649_p3 = scmp.ne.s32.totalorder %s980_s1, %s648_s8  ;;  %p650_p5 = pneg %p880_p2 }
  0x19   : > { %p655_p9 = scmp.lt.s32.totalorder %s648_s8, %s648_s8 }
  0x1a   : > { %p651_p7 = pnand %p650_p5, %p649_p3 }
  0x1c   : > { %p652_p8 = pneg %p651_p7 }
  0x1e   : > { %p657_p10 = pnand %p655_p9, %p652_p8 }
  0x20   : > { %660 = shalt.err (!%p657_p10)
}
  0x21   : > { %s661_s11 = scalar_lea.vmem %s201_s4, 256  ;;  %s668_s15 = scalar_lea.vmem %s201_s4, 512 }
  0x22   : > { %p662_p4 = scmp.ne.s32.totalorder %s201_s4, %s661_s11  ;;  %p669_p13 = scmp.lt.s32.totalorder %s201_s4, %s201_s4 }
  0x23   : > { %p670_p0 = scmp.lt.s32.totalorder %s668_s15, %s661_s11 }
  0x24   : > { %p664_p11 = pnand %p662_p4, %p650_p5 }
  0x25   : > { %p671_p12 = por %p670_p0, %p669_p13 }
  0x26   : > { %p665_p1 = pneg %p664_p11 }
  0x28   : > { %p672_p6 = pnand %p671_p12, %p665_p1 }
  0x2a   : > { %675 = shalt.err (!%p672_p6)
}
  0x2b   : > { %s780_s20 = smov 128   ;;  %s781_s21 = smov 8  }
  0x2c   : > { %558 = dma.hbm_to_vmem [thread:$0]  (!%p880_p2), %s980_s1, 256, %s201_s4, [#allocation3], %s780_s20, %s780_s20, %s781_s21  }
  0x2d   : > { %p531_p3 = scmp.ge.s32.totalorder %s777_s19, 1  ;;  %p223_p7 = scmp.lt.s32.totalorder %s777_s19, 3 }
  0x2f   : > { %p224_p5 = pnand %p531_p3, %p223_p7 }
  0x30   : > { %s229_s26 = sand.u32 (!%p224_p5), 1, %s765_s16   ;;  %p990_p6 = scmp.ne.s32.totalorder (!%p224_p5), %s986_s24, 0 }
  0x31   : > { %227 = sbr.rel (%p224_p5) target bundleno = 703 (0x2bf), region = 32  ;;  %s532_s30 = sshll.u32 (!%p224_p5), %s229_s26, 4 }
  0x32   : > { %s230_s6 = scalar_lea.sflag (!%p224_p5), [#allocation3], %s229_s26  ;;  %s233_s7 = scalar_lea.vmem (!%p224_p5), [#allocation2], %s532_s30 }
  0x36   : > { %739 = dma.done.wait (%p990_p6), %s230_s6, 256  }
  0x37   : > { %741 = vsyncadd (%p990_p6), %s230_s6, 4294967040  ;;  %s269_s4 = sand.u32 1, %s753_s13   ;;  %p273_p12 = scmp.lt.s32.totalorder %s769_s17, 0  ;;  %v782_v0 = vmov 0.0  }
  0x38   : > { %s533_s5 = sshll.u32 %s269_s4, 3  ;;  %p538_p0 = scmp.ge.s32.totalorder %s769_s17, 1 }
  0x39   : > { %s274_s8 = scalar_select %p273_p12, %s769_s17, 0 }
  0x3a   : > { %s909_s9 = scalar_lea.vmem [#allocation5], %s533_s5  ;;  %s539_s26 = sshll.u32 (!%p538_p0), %s769_s17, 4 }
  0x3b   : > { %305 = vst [vmem:[%s909_s9] sm:$0xff] %v782_v0  ;;  %s534_s10 = sshll.u32 %s274_s8, 1  ;;  %s922_s30 = sadd.s32 (!%p538_p0), 16, %s539_s26 }
  0x3c   : > { %p276_p13 = scmp.lt.s32.totalorder %s534_s10, 1  ;;  %309 = sbr.rel (%p538_p0) target bundleno = 679 (0x2a7), region = 44 }
  0x3d   : > { %p540_p2 = scmp.gt.s32.totalorder (!%p538_p0), %s922_s30, 10 }
  0x3e   : > { %s1003_s10 = smov (!%p276_p13, %s534_s10), 1 }
  0x3f   : > { %s535_s11 = sshll.u32 %s1003_s10, 3 }
  0x40   : > { %s279_s20 = scalar_lea.vmem %s979_s0, %s535_s11  ;;  %s295_s25 = scalar_lea.vmem %s981_s2, %s535_s11 }
  0x41   : > { %v310_v1 = vld [vmem:[%s279_s20] sm:$0xff]  ;;  %v311_v3 = vld [vmem:[%s279_s20 + $0x8] sm:$0xff]  ;;  %vm322_vm0 = vcmask 293888   ;;  %vm335_vm1 = vcmask 31744  }
  0x42   : > { %v312_v2 = vld [vmem:[%s233_s7] sm:$0xff]  ;;  %v313_v5 = vld [vmem:[%s233_s7 + $0x8] sm:$0xff] }
  0x43   : > { %v318_v4 = vmin.f32 %v310_v1, %v312_v2  ;;  %v316_v6 = vmax.f32 %v310_v1, %v312_v2  ;;  %v319_v7 = vmin.f32 %v311_v3, %v313_v5  ;;  %v317_v8 = vmax.f32 %v311_v3, %v313_v5  ;;  %v315_v14 = vld [vmem:[%s295_s25 + $0x8] sm:$0xff]  ;;  %v314_v16 = vld [vmem:[%s295_s25] sm:$0xff] }
  0x44   : > { %v339_v17 = vsel %vm335_vm1, %v315_v14, 0.0  ;;  %v336_v18 = vsel %vm335_vm1, %v314_v16, 0.0 }
  0x45   : > { %v320_v9 = vmax.f32 %v318_v4, 1e-06  ;;  %v323_v10 = vsel %vm322_vm0, %v316_v6, 0.0  ;;  %v321_v11 = vmax.f32 %v319_v7, 1e-06  ;;  %v326_v13 = vsel %vm322_vm0, %v317_v8, 0.0 }
  0x46   : > { %324 = vadd.xlane.f32.xlu1 %v323_v10 }
  0x47   : > { %v329_v12 = vsel %vm322_vm0, %v320_v9, 0.0  ;;  %v332_v15 = vsel %vm322_vm0, %v321_v11, 0.0 }
  0x48   : > { %330 = vadd.xlane.f32.xlu0 %v329_v12 }
  0x4a   : > { %327 = vadd.xlane.f32.xlu1 %v326_v13 }
  0x4c   : > { %333 = vadd.xlane.f32.xlu0 %v332_v15 }
  0x4e   : > { %340 = vadd.xlane.f32.xlu1 %v339_v17 }
  0x50   : > { %337 = vadd.xlane.f32.xlu0 %v336_v18 }
  0xcf   : > { %v325_v21 = vpop.xlane.xlu1 %324 }
  0xd1   : > { %v331_v19 = vpop.xlane.xlu0 %330 }
  0xd2   : > { %640 = vrcp.f32 %v331_v19 }
  0xd3   : > { %v328_v24 = vpop.xlane.xlu1 %327 }
  0xd5   : > { %v334_v20 = vpop.xlane.xlu0 %333 }
  0xd6   : > { %642 = vrcp.f32 %v334_v20 }
  0xd7   : > { %v341_v32 = vpop.xlane.xlu1 %340 }
  0xd9   : > { %v338_v28 = vpop.xlane.xlu0 %337 }
  0xdf   : > { %v641_v22 = vpop.eup %640 }
  0xe0   : > { %v343_v23 = vmul.f32 %v641_v22, %v325_v21 }
  0xe2   : > { %644 = vlog2.f32 %v343_v23 }
  0xe3   : > { %v643_v25 = vpop.eup %642 }
  0xe4   : > { %v345_v26 = vmul.f32 %v643_v25, %v328_v24 }
  0xe6   : > { %646 = vlog2.f32 %v345_v26 }
  0xef   : > { %v645_v27 = vpop.eup %644 }
  0xf0   : > { %v347_v29 = vmul.f32 0.6931472, %v645_v27 }
  0xf2   : > { %v350_v30 = vmul.f32 %v347_v29, %v338_v28  ;;  %357 = sbr.rel (%p540_p2) target bundleno = 455 (0x1c7), region = 48 }
  0xf3   : > { %v647_v31 = vpop.eup %646 }
  0xf4   : > { %v349_v33 = vmul.f32 0.6931472, %v647_v31 }
  0xf6   : > { %v351_v34 = vmul.f32 %v349_v33, %v341_v32 }
  0xf7   : > { %vm359_vm2 = vcmask 7168   ;;  %v358_v45 = vld [vmem:[%s909_s9] sm:$0x1]  ;;  %vm374_vm3 = vcmask 0  }
  0xf8   : > { %v360_v35 = vsel %vm359_vm2, %v350_v30, 0.0  ;;  %v361_v36 = vsel %vm359_vm2, %v351_v34, 0.0 }
  0xf9   : > { %v362_v37 = vadd.f32 %v361_v36, %v360_v35 }
  0xfb   : > { %363 = vadd.xlane.f32.xlu0 %v362_v37 }
 0x184   : > { %v364_v38 = vpop.xlane.xlu0 %363 }
 0x185   : > { %v365_v39 = vrot.slane %v364_v38, 4 }
 0x187   : > { %v366_v40 = vadd.f32 %v365_v39, %v364_v38 }
 0x189   : > { %v367_v41 = vrot.slane %v366_v40, 2 }
 0x18b   : > { %v368_v42 = vadd.f32 %v367_v41, %v366_v40 }
 0x18d   : > { %v369_v43 = vrot.slane %v368_v42, 1 }
 0x18f   : > { %v370_v44 = vadd.f32 %v369_v43, %v368_v42 }
 0x191   : > { %547 = vpush %v370_v44 }
 0x1c2   : > { %s548_s6 = spop %547 }
 0x1c3   : > { %v372_v46 = vstv %s548_s6 }
 0x1c4   : > { %v373_v47 = vadd.f32 %v372_v46, %v358_v45 }
 0x1c6   : > { %375 = vst.msk [vmem:[%s909_s9] sm:$0x1] %vm374_vm3, %v373_v47 }
 0x1c7 PF: > { %p541_p8 = scmp.le.s32.totalorder %s922_s30, 10 }
 0x1c9   : > { %379 = sbr.rel (%p541_p8) target bundleno = 679 (0x2a7), region = 52 }
 0x1ce   : > { %v380_v48 = vlaneseq  ;;  %v383_v49 = vstv %s539_s26  ;;  %vm391_vm4 = vcmask 7168   ;;  %v390_v2 = vld [vmem:[%s909_s9] sm:$0x1]  ;;  %vm406_vm7 = vcmask 0  }
 0x1d0   : > { %v381_v50 = vshrl.u32 %v380_v48, 7 }
 0x1d2   : > { %v382_v51 = vadd.s32 8, %v381_v50  ;;  %v384_v52 = vadd.s32 %v383_v49, %v381_v50 }
 0x1d4   : > { %v385_v53 = vadd.s32 %v383_v49, %v382_v51  ;;  %vm386_vm5 = vcmp.lt.s32.totalorder %v384_v52, 10 }
 0x1d5   : > { %v388_v54 = vsel %vm386_vm5, %v350_v30, 0.0 }
 0x1d6   : > { %vm387_vm6 = vcmp.lt.s32.totalorder %v385_v53, 10  ;;  %v392_v55 = vsel %vm391_vm4, %v388_v54, 0.0 }
 0x1d7   : > { %v389_v56 = vsel %vm387_vm6, %v351_v34, 0.0 }
 0x1d8   : > { %v393_v57 = vsel %vm391_vm4, %v389_v56, 0.0 }
 0x1d9   : > { %v394_v58 = vadd.f32 %v393_v57, %v392_v55 }
 0x1db   : > { %395 = vadd.xlane.f32.xlu0 %v394_v58 }
 0x264   : > { %v396_v59 = vpop.xlane.xlu0 %395 }
 0x265   : > { %v397_v60 = vrot.slane %v396_v59, 4 }
 0x267   : > { %v398_v61 = vadd.f32 %v397_v60, %v396_v59 }
 0x269   : > { %v399_v62 = vrot.slane %v398_v61, 2 }
 0x26b   : > { %v400_v63 = vadd.f32 %v399_v62, %v398_v61 }
 0x26d   : > { %v401_v0 = vrot.slane %v400_v63, 1 }
 0x26f   : > { %v402_v1 = vadd.f32 %v401_v0, %v400_v63 }
 0x271   : > { %549 = vpush %v402_v1 }
 0x2a2   : > { %s550_s7 = spop %549 }
 0x2a3   : > { %v404_v3 = vstv %s550_s7 }
 0x2a4   : > { %v405_v4 = vadd.f32 %v404_v3, %v390_v2 }
 0x2a6   : > { %407 = vst.msk [vmem:[%s909_s9] sm:$0x1] %vm406_vm7, %v405_v4 }
 0x2a7 PF: > { %s543_s5 = sshll.u32 %s769_s17, 7  ;;  %s422_s24 = sshll.u32 %s909_s9, 4  ;;  %s423_s24 = int_to_ptr.vmem [resolvable:$true] %s422_s24 }
 0x2a8   : > { %s420_s11 = scalar_lea.hbm %s982_s3, %s543_s5  ;;  %s409_s15 = scalar_lea.sflag [#allocation4], %s269_s4 }
 0x2a9   : > { %s676_s20 = scalar_lea.vmem %s423_s24, 128  ;;  %p991_p10 = scmp.ne.s32.totalorder %s987_s28, 0 }
 0x2aa   : > { %p677_p9 = scmp.ne.s32.totalorder %s423_s24, %s676_s20  ;;  %s783_s21 = smov [#allocation5]  }
 0x2ab   : > { %s680_s23 = sshll.u32 %s783_s21, 4  ;;  %s681_s23 = int_to_ptr.vmem [resolvable:$false] %s680_s23 }
 0x2ac   : > { %p678_p4 = pnand %p677_p9, %p991_p10  ;;  %s682_s25 = scalar_lea.vmem %s681_s23, 256 }
 0x2ad   : > { %p683_p1 = scmp.lt.s32.totalorder %s423_s24, %s681_s23  ;;  %p684_p3 = scmp.lt.s32.totalorder %s682_s25, %s676_s20 }
 0x2ae   : > { %p679_p11 = pneg %p678_p4 }
 0x2af   : > { %p685_p7 = por %p684_p3, %p683_p1 }
 0x2b1   : > { %p686_p5 = pnand %p685_p7, %p679_p11 }
 0x2b3   : > { %689 = shalt.err (!%p686_p5)
}
 0x2b4   : > { %s690_s17 = scalar_lea.hbm %s420_s11, 128  ;;  %s694_s26 = scalar_lea.hbm %s982_s3, 256 }
 0x2b5   : > { %p691_p6 = scmp.ne.s32.totalorder %s420_s11, %s690_s17  ;;  %p695_p0 = scmp.lt.s32.totalorder %s420_s11, %s982_s3 }
 0x2b6   : > { %p696_p2 = scmp.lt.s32.totalorder %s694_s26, %s690_s17 }
 0x2b7   : > { %p692_p12 = pnand %p691_p6, %p991_p10 }
 0x2b8   : > { %p697_p8 = por %p696_p2, %p695_p0 }
 0x2b9   : > { %p693_p13 = pneg %p692_p12 }
 0x2bb   : > { %p698_p9 = pnand %p697_p8, %p693_p13 }
 0x2bd   : > { %701 = shalt.err (!%p698_p9)
}
 0x2be   : > { %553 = dma.vmem_to_hbm [thread:$0]  (%p991_p10), %s423_s24, 128, %s420_s11, %s409_s15  }
 0x2bf PF: > { %s434_s7 = sand.u32 1, %s749_s12   ;;  %p992_p4 = scmp.ne.s32.totalorder %s988_s29, 0 }
 0x2c0   : > { %p993_p11 = scmp.ge.s32.totalorder %s777_s19, 2  ;;  %s435_s5 = scalar_lea.sflag [#allocation4], %s434_s7 }
 0x2c2   : > { %p560_p1 = pnand %p993_p11, %p992_p4 }
 0x2c4   : > { %p561_p3 = pneg %p560_p1 }
 0x2c6   : > { %743 = dma.done.wait (%p561_p3), %s435_s5, 128  }
 0x2c7   : > { %745 = vsyncadd (%p561_p3), %s435_s5, 4294967168  ;;  %s19_s19 = sadd.s32 1, %s777_s19   ;;  %s994_s12 = smov %s753_s13 }
 0x2c8   : > { %p16_p7 = scmp.ge.s32.totalorder %s19_s19, 4   ;;  %s995_s13 = smov %s757_s14 }
 0x2c9   : > { %s996_s14 = smov %s862_s27  ;;  %s997_s15 = smov %s765_s16 }
 0x2ca   : > { %s969_s16 = smov 0   ;;  %s998_s17 = smov %s773_s18 }
 0x2cb   : > { %s999_s18 = smov %s1001_s22  ;;  %18 = sbr.rel (!%p16_p7) target bundleno = 7 (0x7), region = 99 }
 0x2d0   :  { %440 = vsyncpa [#allocation3], 1 }
 0x2d1   :  { %442 = vsyncpa [#allocation3 + $0x1], 1 }
 0x2d2   :  { %443 = vsyncpa [#allocation4], 1 }
 0x2d3   :  { %445 = vsyncpa [#allocation4 + $0x1], 1 }

</bundles_post_ra>
